<compile_context>
chip_gen: v7x
topology: tpu7x:2x2x1
jax: 0.10.0
libtpu: 0.0.40
codegen_flags: <defaults>
</compile_context>

<pallas_src>
import functools
import math

import jax
import jax.numpy as jnp
from jax.experimental import pallas as pl
from jax.experimental.pallas import tpu as pltpu

_SQRT_2_OVER_PI = 0.7978845608028654
_GELU_COEFF = 0.044715


def _gelu_tanh(x):
    # TODO(synk): PyTorch F.gelu defaults to the exact erf form; the tanh
    # approximation is used here (max abs err ~1e-3) because erf has no
    # guaranteed Mosaic lowering. Everything else matches the reference.
    return 0.5 * x * (1.0 + jnp.tanh(_SQRT_2_OVER_PI * (x + _GELU_COEFF * x * x * x)))


# ---------------------------------------------------------------------------
# Pallas kernel: one M-tile of  o = gelu(x @ W1 + b1) @ W2 + b2
# ---------------------------------------------------------------------------
def _mlp_kernel(x_ref, w1_ref, b1_ref, w2_ref, b2_ref, o_ref):
    x = x_ref[...]                                                  # (tm, d_in)
    h = jnp.dot(x, w1_ref[...], preferred_element_type=jnp.float32)  # MXU
    h = h + b1_ref[...]                                             # (tm, d_hidden)
    h = _gelu_tanh(h)                                               # VPU/EUP
    y = jnp.dot(h, w2_ref[...], preferred_element_type=jnp.float32)  # MXU
    y = y + b2_ref[...]                                             # (tm, d_out)
    o_ref[...] = y.astype(o_ref.dtype)


# ---------------------------------------------------------------------------
# Wrapper
# ---------------------------------------------------------------------------
def _round_up(x, m):
    return (x + m - 1) // m * m


def mlp_forward(x, w1, b1, w2, b2, *, block_m=256):
    """x: (..., d_in); w1: (d_in, d_hidden); w2: (d_hidden, d_out)."""
    lead = x.shape[:-1]
    d_in = x.shape[-1]
    d_hidden = w1.shape[1]
    d_out = w2.shape[1]

    xf = x.reshape(-1, d_in)
    m = xf.shape[0]
    tm = min(block_m, _round_up(m, 8))          # sublane-aligned row tile
    mp = _round_up(m, tm)
    if mp != m:
        xf = jnp.pad(xf, ((0, mp - m), (0, 0)))

    out = pl.pallas_call(
        _mlp_kernel,
        out_shape=jax.ShapeDtypeStruct((mp, d_out), x.dtype),
        grid=(mp // tm,),
        in_specs=[
            pl.BlockSpec((tm, d_in), lambda i: (i, 0)),             # activations: tiled over M
            pl.BlockSpec((d_in, d_hidden), lambda i: (0, 0)),       # W1: VMEM-resident
            pl.BlockSpec((1, d_hidden), lambda i: (0, 0)),          # b1
            pl.BlockSpec((d_hidden, d_out), lambda i: (0, 0)),      # W2: VMEM-resident
            pl.BlockSpec((1, d_out), lambda i: (0, 0)),             # b2
        ],
        out_specs=pl.BlockSpec((tm, d_out), lambda i: (i, 0)),
        compiler_params=pltpu.CompilerParams(
            dimension_semantics=("parallel",),                      # megacore-shard M tiles (v7x)
        ),
    )(xf, w1, b1.reshape(1, d_hidden), w2, b2.reshape(1, d_out))

    return out[:m].reshape(lead + (d_out,))


# ---------------------------------------------------------------------------
# Pure-JAX reference (same tanh GELU) for self-check
# ---------------------------------------------------------------------------
def mlp_reference(x, w1, b1, w2, b2):
    h = x @ w1 + b1
    h = _gelu_tanh(h)
    return h @ w2 + b2


# ---------------------------------------------------------------------------
# PyTorch-Linear-style parameter init (U(-1/sqrt(fan_in), 1/sqrt(fan_in)))
# Weights are stored transposed vs. torch ((in, out)) for lane-dense matmuls.
# ---------------------------------------------------------------------------
def init_mlp_params(key, d_in, d_hidden, d_out):
    k1, k2, k3, k4 = jax.random.split(key, 4)
    bound1 = 1.0 / math.sqrt(d_in)
    bound2 = 1.0 / math.sqrt(d_hidden)
    w1 = jax.random.uniform(k1, (d_in, d_hidden), jnp.float32, -bound1, bound1)
    b1 = jax.random.uniform(k2, (d_hidden,), jnp.float32, -bound1, bound1)
    w2 = jax.random.uniform(k3, (d_hidden, d_out), jnp.float32, -bound2, bound2)
    b2 = jax.random.uniform(k4, (d_out,), jnp.float32, -bound2, bound2)
    return w1, b1, w2, b2


# ---------------------------------------------------------------------------
# Main
# ---------------------------------------------------------------------------
if __name__ == "__main__":
    key = jax.random.PRNGKey(0)
    kx, kp = jax.random.split(key)

    B, N = 2, 64                       # batch of token sequences
    D_IN, D_HIDDEN, D_OUT = 32, 128, 32

    x = jax.random.normal(kx, (B, N, D_IN), jnp.float32)
    w1, b1, w2, b2 = init_mlp_params(kp, D_IN, D_HIDDEN, D_OUT)

    # block_m=64 -> 2 grid steps over the 128 flattened tokens.
    y = mlp_forward(x, w1, b1, w2, b2, block_m=64)
    y = jax.block_until_ready(y)

    assert y.shape == (B, N, D_OUT)
    assert bool(jnp.all(jnp.isfinite(y)))

    y_ref = mlp_reference(x, w1, b1, w2, b2)
    assert bool(jnp.allclose(y, y_ref, atol=1e-4, rtol=1e-4)), (
        float(jnp.max(jnp.abs(y - y_ref))))

    print("KERNEL_OK")
</pallas_src>

<mosaic_0001>
module attributes {stable_mosaic.version = 11 : i64} {
  func.func @_mlp_kernel(%arg0: i32, %arg1: memref<64x32xf32, #tpu.memory_space<vmem>>, %arg2: memref<32x128xf32, #tpu.memory_space<vmem>>, %arg3: memref<1x128xf32, #tpu.memory_space<vmem>>, %arg4: memref<128x32xf32, #tpu.memory_space<vmem>>, %arg5: memref<1x32xf32, #tpu.memory_space<vmem>>, %arg6: memref<64x32xf32, #tpu.memory_space<vmem>>) attributes {dimension_semantics = [#tpu.dimension_semantics<parallel>], iteration_bounds = array<i64: 2>, scalar_prefetch = 0 : i64, scratch_operands = 0 : i64, tpu.core_type = #tpu.core_type<tc>, window_params = [{transform_indices = @transform_0, window_bounds = array<i64: 64, 32>}, {pipeline_mode = #tpu.pipeline_mode<synchronous>, transform_indices = @transform_1, window_bounds = array<i64: 32, 128>}, {pipeline_mode = #tpu.pipeline_mode<synchronous>, transform_indices = @transform_2, window_bounds = array<i64: 1, 128>}, {pipeline_mode = #tpu.pipeline_mode<synchronous>, transform_indices = @transform_3, window_bounds = array<i64: 128, 32>}, {pipeline_mode = #tpu.pipeline_mode<synchronous>, transform_indices = @transform_4, window_bounds = array<i64: 1, 32>}, {transform_indices = @transform_5, window_bounds = array<i64: 64, 32>}]} {
    %c0 = arith.constant 0 : index
    %c0_0 = arith.constant 0 : index
    %0 = vector.load %arg1[%c0, %c0_0] : memref<64x32xf32, #tpu.memory_space<vmem>>, vector<64x32xf32>
    %c0_1 = arith.constant 0 : index
    %c0_2 = arith.constant 0 : index
    %1 = vector.load %arg2[%c0_1, %c0_2] : memref<32x128xf32, #tpu.memory_space<vmem>>, vector<32x128xf32>
    %cst = arith.constant dense<0.000000e+00> : vector<64x128xf32>
    %2 = tpu.matmul %0, %1, %cst {dimension_numbers = #tpu.dot_dimension_numbers<[1], [0], [0], [1], [0, 0, 1, 1], [], []>} : vector<64x32xf32>, vector<32x128xf32>, vector<64x128xf32> -> vector<64x128xf32>
    %c0_3 = arith.constant 0 : index
    %c0_4 = arith.constant 0 : index
    %3 = vector.load %arg3[%c0_3, %c0_4] : memref<1x128xf32, #tpu.memory_space<vmem>>, vector<1x128xf32>
    %4 = vector.broadcast %3 : vector<1x128xf32> to vector<64x128xf32>
    %5 = arith.addf %2, %4 : vector<64x128xf32>
    %cst_5 = arith.constant 5.000000e-01 : f32
    %6 = vector.broadcast %cst_5 : f32 to vector<64x128xf32>
    %7 = arith.mulf %6, %5 : vector<64x128xf32>
    %cst_6 = arith.constant 4.471500e-02 : f32
    %8 = vector.broadcast %cst_6 : f32 to vector<64x128xf32>
    %9 = arith.mulf %8, %5 : vector<64x128xf32>
    %10 = arith.mulf %9, %5 : vector<64x128xf32>
    %11 = arith.mulf %10, %5 : vector<64x128xf32>
    %12 = arith.addf %5, %11 : vector<64x128xf32>
    %cst_7 = arith.constant 0.797884583 : f32
    %13 = vector.broadcast %cst_7 : f32 to vector<64x128xf32>
    %14 = arith.mulf %13, %12 : vector<64x128xf32>
    %15 = math.tanh %14 : vector<64x128xf32>
    %cst_8 = arith.constant 1.000000e+00 : f32
    %16 = vector.broadcast %cst_8 : f32 to vector<64x128xf32>
    %17 = arith.addf %16, %15 : vector<64x128xf32>
    %18 = arith.mulf %7, %17 : vector<64x128xf32>
    %c0_9 = arith.constant 0 : index
    %c0_10 = arith.constant 0 : index
    %19 = vector.load %arg4[%c0_9, %c0_10] : memref<128x32xf32, #tpu.memory_space<vmem>>, vector<128x32xf32>
    %cst_11 = arith.constant dense<0.000000e+00> : vector<64x32xf32>
    %20 = tpu.matmul %18, %19, %cst_11 {dimension_numbers = #tpu.dot_dimension_numbers<[1], [0], [0], [1], [0, 0, 1, 1], [], []>} : vector<64x128xf32>, vector<128x32xf32>, vector<64x32xf32> -> vector<64x32xf32>
    %c0_12 = arith.constant 0 : index
    %c0_13 = arith.constant 0 : index
    %21 = vector.load %arg5[%c0_12, %c0_13] : memref<1x32xf32, #tpu.memory_space<vmem>>, vector<1x32xf32>
    %22 = vector.broadcast %21 : vector<1x32xf32> to vector<64x32xf32>
    %23 = arith.addf %20, %22 : vector<64x32xf32>
    %c0_14 = arith.constant 0 : index
    %c0_15 = arith.constant 0 : index
    %24 = vector.load %arg6[%c0_14, %c0_15] : memref<64x32xf32, #tpu.memory_space<vmem>>, vector<64x32xf32>
    tpu.vector_store %arg6[%c0_14, %c0_15], %23 {strides = array<i32>} : memref<64x32xf32, #tpu.memory_space<vmem>>, vector<64x32xf32>,
    return
  }
  func.func @transform_0(%arg0: i32) -> (i32, i32) {
    %c0_i32 = arith.constant 0 : i32
    %c0_i32_0 = arith.constant 0 : i32
    return %arg0, %c0_i32 : i32, i32
  }
  func.func @transform_1(%arg0: i32) -> (i32, i32) {
    %c0_i32 = arith.constant 0 : i32
    %c0_i32_0 = arith.constant 0 : i32
    %c0_i32_1 = arith.constant 0 : i32
    return %c0_i32, %c0_i32_0 : i32, i32
  }
  func.func @transform_2(%arg0: i32) -> (i32, i32) {
    %c0_i32 = arith.constant 0 : i32
    %c0_i32_0 = arith.constant 0 : i32
    %c0_i32_1 = arith.constant 0 : i32
    return %c0_i32, %c0_i32_0 : i32, i32
  }
  func.func @transform_3(%arg0: i32) -> (i32, i32) {
    %c0_i32 = arith.constant 0 : i32
    %c0_i32_0 = arith.constant 0 : i32
    %c0_i32_1 = arith.constant 0 : i32
    return %c0_i32, %c0_i32_0 : i32, i32
  }
  func.func @transform_4(%arg0: i32) -> (i32, i32) {
    %c0_i32 = arith.constant 0 : i32
    %c0_i32_0 = arith.constant 0 : i32
    %c0_i32_1 = arith.constant 0 : i32
    return %c0_i32, %c0_i32_0 : i32, i32
  }
  func.func @transform_5(%arg0: i32) -> (i32, i32) {
    %c0_i32 = arith.constant 0 : i32
    %c0_i32_0 = arith.constant 0 : i32
    return %arg0, %c0_i32 : i32, i32
  }
}

</mosaic_0001>

<bundles_post_ra>
// kernel: tpu_custom_call.1
= control target key start
LH: loop header
LB: loop body
LE: loop exit
PB: predicated region body
PF: predicated region fallthrough
CT: control target
= control target key end

     0   :  { %s880_s18 = smov 0   ;;  %s1028_s0 = inlined_call_operand.vmem [shape: f32[128,32], index: 0, kind: input, shape index: {}]   ;;  %s1029_s1 = inlined_call_operand.vmem [shape: f32[32,128], index: 1, kind: input, shape index: {}]   ;;  %s1030_s2 = inlined_call_operand.vmem [shape: f32[1,128], index: 2, kind: input, shape index: {}]   ;;  %s1031_s3 = inlined_call_operand.vmem [shape: f32[128,32], index: 3, kind: input, shape index: {}]   ;;  %s1032_s4 = inlined_call_operand.vmem [shape: f32[1,32], index: 4, kind: input, shape index: {}]   ;;  %s1033_s5 = inlined_call_operand.vmem [shape: f32[128,32], index: 5, kind: output, shape index: {}]  }
   0x1 LB: > { %s641_s19 = sadd.s32 4294967295, %s848_s18   ;;  %p645_p0 = scmp.ge.s32.totalorder %s848_s18, 1  ;;  %s848_s18 = sphi %s880_s18, %s15_s18  }
   0x2   : > { %p188_p1 = scmp.lt.s32.totalorder %s848_s18, 3 }
   0x4   : > { %p189_p2 = pnand %p645_p0, %p188_p1 }
   0x5   : > { %v236_v0 = vld [vmem:[%s1029_s1] sm:$0xff] (!%p189_p2)  ;;  %v237_v1 = vld [vmem:[%s1029_s1 + $0x8] sm:$0xff] (!%p189_p2)  ;;  %v238_v2 = vld [vmem:[%s1029_s1 + $0x10] sm:$0xff] (!%p189_p2)  ;;  %s646_s26 = sshll.u32 (!%p189_p2), %s641_s19, 3  ;;  %vm247_vm0 = vcmask (!%p189_p2), 261120  }
   0x6   : > { %192 = sbr.rel (%p189_p2) target bundleno = 487 (0x1e7), region = 40  ;;  %v762_v3 = vpack.c.bf16 (!%p189_p2), %v237_v1, %v236_v0  ;;  %v239_v4 = vld [vmem:[%s1029_s1 + $0x18] sm:$0xff] (!%p189_p2)  ;;  %p217_p3 = scmp.lt.s32.totalorder (!%p189_p2), %s646_s26, 15  ;;  %v449_v5 = vld [vmem:[%s1031_s3] sm:$0xff] (!%p189_p2)  ;;  %v450_v6 = vld [vmem:[%s1031_s3 + $0x8] sm:$0xff] (!%p189_p2) }
   0x7   : > { %v766_v7 = vpack.c.bf16 (!%p189_p2), %v239_v4, %v238_v2  ;;  %v770_v8 = vpack.c.bf16 (!%p189_p2), %v450_v6, %v449_v5  ;;  %v451_v17 = vld [vmem:[%s1031_s3 + $0x10] sm:$0xff] (!%p189_p2)  ;;  %v452_v18 = vld [vmem:[%s1031_s3 + $0x18] sm:$0xff] (!%p189_p2)  ;;  %v453_v20 = vld [vmem:[%s1031_s3 + $0x20] sm:$0xff] (!%p189_p2) }
   0x8   : > { %763 = vmatprep.subr.bf16.mxu0 (!%p189_p2), %v762_v3  ;;  %v774_v19 = vpack.c.bf16 (!%p189_p2), %v452_v18, %v451_v17  ;;  %v454_v21 = vld [vmem:[%s1031_s3 + $0x28] sm:$0xff] (!%p189_p2)  ;;  %v455_v23 = vld [vmem:[%s1031_s3 + $0x30] sm:$0xff] (!%p189_p2)  ;;  %v456_v24 = vld [vmem:[%s1031_s3 + $0x38] sm:$0xff] (!%p189_p2) }
   0x9   : > { %765 = vmatpush3.bf16.msra.mxu0 (!%p189_p2), %v762_v3  ;;  %802 = vmatprep.subr.bf16.mxu1 (!%p189_p2), %v770_v8  ;;  %v778_v22 = vpack.c.bf16 (!%p189_p2), %v454_v21, %v453_v20  ;;  %v782_v25 = vpack.c.bf16 (!%p189_p2), %v456_v24, %v455_v23  ;;  %v457_v26 = vld [vmem:[%s1031_s3 + $0x40] sm:$0xff] (!%p189_p2)  ;;  %v458_v27 = vld [vmem:[%s1031_s3 + $0x48] sm:$0xff] (!%p189_p2)  ;;  %v459_v29 = vld [vmem:[%s1031_s3 + $0x50] sm:$0xff] (!%p189_p2) }
   0xa   : > { %767 = vmatprep.subr.bf16.mxu0 (!%p189_p2), %v766_v7  ;;  %810 = vmatpush3.bf16.msra.mxu1 (!%p189_p2), %v770_v8  ;;  %v786_v28 = vpack.c.bf16 (!%p189_p2), %v458_v27, %v457_v26  ;;  %v460_v30 = vld [vmem:[%s1031_s3 + $0x58] sm:$0xff] (!%p189_p2)  ;;  %v461_v32 = vld [vmem:[%s1031_s3 + $0x60] sm:$0xff] (!%p189_p2)  ;;  %v462_v33 = vld [vmem:[%s1031_s3 + $0x68] sm:$0xff] (!%p189_p2) }
   0xb   : > { %803 = vmatprep.subr.bf16.mxu1 (!%p189_p2), %v774_v19  ;;  %v790_v31 = vpack.c.bf16 (!%p189_p2), %v460_v30, %v459_v29  ;;  %v463_v34 = vld [vmem:[%s1031_s3 + $0x70] sm:$0xff] (!%p189_p2)  ;;  %v794_v35 = vpack.c.bf16 (!%p189_p2), %v462_v33, %v461_v32  ;;  %v464_v36 = vld [vmem:[%s1031_s3 + $0x78] sm:$0xff] (!%p189_p2)  ;;  %v650_v38 = vld [vmem:[%s1030_s2] ss:$0 sm:$0xff] (!%p189_p2) }
   0xc   : > { %v798_v37 = vpack.c.bf16 (!%p189_p2), %v464_v36, %v463_v34 }
   0xd   : > { %s1035_s26 = smov (!%p217_p3, %s646_s26), 15  ;;  %769 = vmatpush3.bf16.msra.mxu0 %v766_v7 }
   0xe   : > { %s647_s8 = sshll.u32 %s1035_s26, 3  ;;  %771 = vmatprep.subr.bf16.mxu0 %v770_v8  ;;  %811 = vmatpush3.bf16.msra.mxu1 %v774_v19 }
   0xf   : > { %s220_s11 = scalar_lea.vmem %s1028_s0, %s647_s8  ;;  %804 = vmatprep.subr.bf16.mxu1 %v778_v22  ;;  %s226_s25 = scalar_lea.vmem %s1033_s5, %s647_s8 }
  0x10   : > { %v228_v9 = vld [vmem:[%s220_s11] sm:$0xff]  ;;  %v229_v10 = vld [vmem:[%s220_s11 + $0x8] sm:$0xff]  ;;  %v230_v11 = vld [vmem:[%s220_s11 + $0x10] sm:$0xff] }
  0x11   : > { %706 = vmatprep.mubr.msk.f32.mxu0 %vm247_vm0, %v228_v9  ;;  %v231_v12 = vld [vmem:[%s220_s11 + $0x18] sm:$0xff]  ;;  %v232_v13 = vld [vmem:[%s220_s11 + $0x20] sm:$0xff]  ;;  %v233_v14 = vld [vmem:[%s220_s11 + $0x28] sm:$0xff] }
  0x12   : > { %707 = vmatmul.mubr.msk.f32.vlgmr.msra.gmra.mrb[0].mxu0 %vm247_vm0, %v229_v10  ;;  %v234_v15 = vld [vmem:[%s220_s11 + $0x30] sm:$0xff]  ;;  %v235_v16 = vld [vmem:[%s220_s11 + $0x38] sm:$0xff]  ;;  %812 = vmatpush3.bf16.msra.mxu1 %v778_v22 }
  0x13   : > { %709 = vmatprep.mubr.msk.f32.mxu0 %vm247_vm0, %v230_v11  ;;  %773 = vmatpush3.bf16.msra.mxu0 %v770_v8 }
  0x14   : > { %775 = vmatprep.subr.bf16.mxu0 %v774_v19  ;;  %805 = vmatprep.subr.bf16.mxu1 %v782_v25 }
  0x16   : > { %710 = vmatmul.mubr.msk.f32.gmra.mrb[2].mxu0 %vm247_vm0, %v231_v12  ;;  %813 = vmatpush3.bf16.msra.mxu1 %v782_v25 }
  0x17   : > { %712 = vmatprep.mubr.msk.f32.mxu0 %vm247_vm0, %v232_v13  ;;  %777 = vmatpush3.bf16.msra.mxu0 %v774_v19 }
  0x18   : > { %779 = vmatprep.subr.bf16.mxu0 %v778_v22  ;;  %806 = vmatprep.subr.bf16.mxu1 %v786_v28 }
  0x1a   : > { %713 = vmatmul.mubr.msk.f32.gmra.mrb[4].mxu0 %vm247_vm0, %v233_v14  ;;  %814 = vmatpush3.bf16.msra.mxu1 %v786_v28 }
  0x1b   : > { %715 = vmatprep.mubr.msk.f32.mxu0 %vm247_vm0, %v234_v15  ;;  %781 = vmatpush3.bf16.msra.mxu0 %v778_v22 }
  0x1c   : > { %783 = vmatprep.subr.bf16.mxu0 %v782_v25  ;;  %807 = vmatprep.subr.bf16.mxu1 %v790_v31 }
  0x1e   : > { %716 = vmatmul.mubr.msk.f32.gmra.mrb[6].mxu0 %vm247_vm0, %v235_v16  ;;  %815 = vmatpush3.bf16.msra.mxu1 %v790_v31 }
  0x1f   : > { %785 = vmatpush3.bf16.msra.mxu0 %v782_v25  ;;  %808 = vmatprep.subr.bf16.mxu1 %v794_v35 }
  0x20   : > { %787 = vmatprep.subr.bf16.mxu0 %v786_v28 }
  0x22   : > { %816 = vmatpush3.bf16.msra.mxu1 %v794_v35 }
  0x23   : > { %789 = vmatpush3.bf16.msra.mxu0 %v786_v28  ;;  %809 = vmatprep.subr.bf16.mxu1 %v798_v37 }
  0x24   : > { %791 = vmatprep.subr.bf16.mxu0 %v790_v31 }
  0x26   : > { %817 = vmatpush3.bf16.msra.mxu1 %v798_v37 }
  0x27   : > { %793 = vmatpush3.bf16.msra.mxu0 %v790_v31 }
  0x28   : > { %795 = vmatprep.subr.bf16.mxu0 %v794_v35 }
  0x2b   : > { %797 = vmatpush3.bf16.msra.mxu0 %v794_v35 }
  0x2c   : > { %799 = vmatprep.subr.bf16.mxu0 %v798_v37 }
  0x2f   : > { %801 = vmatpush3.bf16.msra.mxu0 %v798_v37 }
  0xe5   : > { %v708_v39 = vpop.f32.mrb[0].mxu0 }
  0xe6   : > { %v967_v40 = vadd.f32 %v708_v39, %v650_v38  ;;  %v338_v41 = vpop.f32.mrb[1].mxu0 }
  0xe7   : > { %v339_v42 = vadd.f32 %v650_v38, %v338_v41 }
  0xe8   : > { %v386_v43 = vmul.f32 0.044715, %v967_v40  ;;  %v378_v36 = vmul.f32 0.5, %v967_v40 }
  0xe9   : > { %v385_v44 = vmul.f32 0.044715, %v339_v42  ;;  %v711_v45 = vpop.f32.mrb[2].mxu0  ;;  %v377_v34 = vmul.f32 0.5, %v339_v42 }
  0xea   : > { %v394_v46 = vmul.f32 %v386_v43, %v967_v40  ;;  %v971_v47 = vadd.f32 %v711_v45, %v650_v38  ;;  %v348_v48 = vpop.f32.mrb[3].mxu0 }
  0xeb   : > { %v393_v49 = vmul.f32 %v385_v44, %v339_v42  ;;  %v973_v50 = vadd.f32 %v650_v38, %v348_v48 }
  0xec   : > { %v402_v51 = vmul.f32 %v394_v46, %v967_v40  ;;  %v388_v52 = vmul.f32 0.044715, %v971_v47  ;;  %v380_v46 = vmul.f32 0.5, %v971_v47 }
  0xed   : > { %v714_v53 = vpop.f32.mrb[4].mxu0  ;;  %v401_v54 = vmul.f32 %v393_v49, %v339_v42  ;;  %v387_v55 = vmul.f32 0.044715, %v973_v50  ;;  %v379_v44 = vmul.f32 0.5, %v973_v50 }
  0xee   : > { %v410_v56 = vadd.f32 %v402_v51, %v967_v40  ;;  %v396_v57 = vmul.f32 %v388_v52, %v971_v47  ;;  %v980_v58 = vadd.f32 %v714_v53, %v650_v38  ;;  %v358_v59 = vpop.f32.mrb[5].mxu0 }
  0xef   : > { %v982_v60 = vadd.f32 %v650_v38, %v358_v59  ;;  %v409_v61 = vadd.f32 %v401_v54, %v339_v42  ;;  %v395_v62 = vmul.f32 %v387_v55, %v973_v50 }
  0xf0   : > { %v418_v63 = vmul.f32 0.7978846, %v410_v56  ;;  %v390_v0 = vmul.f32 0.044715, %v980_v58  ;;  %v404_v1 = vmul.f32 %v396_v57, %v971_v47  ;;  %v382_v54 = vmul.f32 0.5, %v980_v58 }
  0xf1   : > { %v389_v2 = vmul.f32 0.044715, %v982_v60  ;;  %v717_v3 = vpop.f32.mrb[6].mxu0  ;;  %v417_v4 = vmul.f32 0.7978846, %v409_v61  ;;  %v403_v5 = vmul.f32 %v395_v62, %v973_v50  ;;  %v381_v40 = vmul.f32 0.5, %v982_v60 }
  0xf2   : > { %826 = vtanh.f32 %v418_v63  ;;  %v398_v6 = vmul.f32 %v390_v0, %v980_v58  ;;  %v990_v7 = vadd.f32 %v717_v3, %v650_v38  ;;  %v368_v8 = vpop.f32.mrb[7].mxu0  ;;  %v412_v9 = vadd.f32 %v404_v1, %v971_v47 }
  0xf3   : > { %v397_v10 = vmul.f32 %v389_v2, %v982_v60  ;;  %v369_v11 = vadd.f32 %v650_v38, %v368_v8  ;;  %828 = vtanh.f32 %v417_v4  ;;  %v411_v12 = vadd.f32 %v403_v5, %v973_v50 }
  0xf4   : > { %v392_v13 = vmul.f32 0.044715, %v990_v7  ;;  %v420_v14 = vmul.f32 0.7978846, %v412_v9  ;;  %v406_v15 = vmul.f32 %v398_v6, %v980_v58  ;;  %v384_v62 = vmul.f32 0.5, %v990_v7 }
  0xf5   : > { %v391_v16 = vmul.f32 0.044715, %v369_v11  ;;  %v419_v17 = vmul.f32 0.7978846, %v411_v12  ;;  %v405_v18 = vmul.f32 %v397_v10, %v982_v60  ;;  %v383_v47 = vmul.f32 0.5, %v369_v11 }
  0xf6   : > { %v400_v19 = vmul.f32 %v392_v13, %v990_v7  ;;  %830 = vtanh.f32 %v420_v14  ;;  %v414_v20 = vadd.f32 %v406_v15, %v980_v58  ;;  %v659_v58 = vld [vmem:[%s1032_s4] ss:$0 sm:$0xff] }
  0xf7   : > { %v399_v21 = vmul.f32 %v391_v16, %v369_v11  ;;  %832 = vtanh.f32 %v419_v17  ;;  %v413_v22 = vadd.f32 %v405_v18, %v982_v60 }
  0xf8   : > { %v422_v23 = vmul.f32 0.7978846, %v414_v20  ;;  %v408_v24 = vmul.f32 %v400_v19, %v990_v7 }
  0xf9   : > { %v421_v25 = vmul.f32 0.7978846, %v413_v22  ;;  %v407_v26 = vmul.f32 %v399_v21, %v369_v11 }
  0xfa   : > { %834 = vtanh.f32 %v422_v23  ;;  %v416_v27 = vadd.f32 %v408_v24, %v990_v7 }
  0xfb   : > { %836 = vtanh.f32 %v421_v25  ;;  %v415_v28 = vadd.f32 %v407_v26, %v369_v11 }
  0xfc   : > { %v827_v29 = vpop.eup %826  ;;  %v424_v30 = vmul.f32 0.7978846, %v416_v27 }
  0xfd   : > { %v829_v31 = vpop.eup %828  ;;  %v434_v32 = vadd.f32 1.0, %v827_v29  ;;  %v423_v33 = vmul.f32 0.7978846, %v415_v28 }
  0xfe   : > { %v433_v35 = vadd.f32 1.0, %v829_v31  ;;  %838 = vtanh.f32 %v424_v30 }
  0xff   : > { %840 = vtanh.f32 %v423_v33  ;;  %v442_v41 = vmul.f32 %v434_v32, %v378_v36 }
 0x100   : > { %v831_v37 = vpop.eup %830  ;;  %v441_v38 = vmul.f32 %v433_v35, %v377_v34 }
 0x101   : > { %v833_v39 = vpop.eup %832  ;;  %v436_v43 = vadd.f32 1.0, %v831_v37 }
 0x102   : > { %750 = vmatprep.mubr.f32.mxu0 %v441_v38  ;;  %v435_v45 = vadd.f32 1.0, %v833_v39 }
 0x103   : > { %751 = vmatmul.mubr.f32.vlgmr.msra.gmra.mrb[8].mxu0 %v442_v41  ;;  %v444_v51 = vmul.f32 %v436_v43, %v380_v46 }
 0x104   : > { %v835_v48 = vpop.eup %834  ;;  %v443_v49 = vmul.f32 %v435_v45, %v379_v44 }
 0x105   : > { %v837_v42 = vpop.eup %836  ;;  %v438_v52 = vadd.f32 1.0, %v835_v48 }
 0x106   : > { %753 = vmatprep.mubr.f32.mxu1 %v443_v49  ;;  %v437_v53 = vadd.f32 1.0, %v837_v42 }
 0x107   : > { %754 = vmatmul.mubr.f32.vlgmr.msra.gmra.mrb[0].mxu1 %v444_v51  ;;  %v446_v57 = vmul.f32 %v438_v52, %v382_v54 }
 0x108   : > { %v839_v55 = vpop.eup %838  ;;  %v445_v56 = vmul.f32 %v437_v53, %v381_v40 }
 0x109   : > { %v841_v50 = vpop.eup %840  ;;  %v440_v59 = vadd.f32 1.0, %v839_v55 }
 0x10a   : > { %756 = vmatprep.mubr.f32.mxu1 %v445_v56  ;;  %v439_v61 = vadd.f32 1.0, %v841_v50 }
 0x10b   : > { %757 = vmatmul.mubr.f32.gmra.mrb[2].mxu1 %v446_v57  ;;  %v448_v0 = vmul.f32 %v440_v59, %v384_v62 }
 0x10c   : > { %v447_v63 = vmul.f32 %v439_v61, %v383_v47 }
 0x10e   : > { %759 = vmatprep.mubr.f32.mxu1 %v447_v63 }
 0x10f   : > { %760 = vmatmul.mubr.f32.gmra.mrb[4].mxu1 %v448_v0 }
 0x1d6   : > { %v752_v60 = vpop.f32.mrb[8].mxu0 }
 0x1d7   : > { %v544_v1 = vadd.f32 %v752_v60, %v659_v58  ;;  %v538_v2 = vpop.f32.mrb[9].mxu0 }
 0x1d8   : > { %v539_v3 = vadd.f32 %v659_v58, %v538_v2 }
 0x1d9   : > { %578 = vst.msk [vmem:[%s226_s25 + $0x8] sm:$0xff] %vm247_vm0, %v544_v1 }
 0x1da   : > { %577 = vst.msk [vmem:[%s226_s25] sm:$0xff] %vm247_vm0, %v539_v3  ;;  %v755_v4 = vpop.f32.mrb[0].mxu1 }
 0x1db   : > { %v554_v5 = vadd.f32 %v755_v4, %v659_v58  ;;  %v548_v6 = vpop.f32.mrb[1].mxu1 }
 0x1dc   : > { %v549_v7 = vadd.f32 %v659_v58, %v548_v6 }
 0x1dd   : > { %580 = vst.msk [vmem:[%s226_s25 + $0x18] sm:$0xff] %vm247_vm0, %v554_v5 }
 0x1de   : > { %579 = vst.msk [vmem:[%s226_s25 + $0x10] sm:$0xff] %vm247_vm0, %v549_v7  ;;  %v758_v8 = vpop.f32.mrb[2].mxu1 }
 0x1df   : > { %v564_v9 = vadd.f32 %v758_v8, %v659_v58  ;;  %v558_v10 = vpop.f32.mrb[3].mxu1 }
 0x1e0   : > { %v559_v11 = vadd.f32 %v659_v58, %v558_v10 }
 0x1e1   : > { %582 = vst.msk [vmem:[%s226_s25 + $0x28] sm:$0xff] %vm247_vm0, %v564_v9 }
 0x1e2   : > { %581 = vst.msk [vmem:[%s226_s25 + $0x20] sm:$0xff] %vm247_vm0, %v559_v11  ;;  %v761_v12 = vpop.f32.mrb[4].mxu1 }
 0x1e3   : > { %v574_v13 = vadd.f32 %v761_v12, %v659_v58  ;;  %v568_v14 = vpop.f32.mrb[5].mxu1 }
 0x1e4   : > { %v569_v15 = vadd.f32 %v659_v58, %v568_v14 }
 0x1e5   : > { %584 = vst.msk [vmem:[%s226_s25 + $0x38] sm:$0xff] %vm247_vm0, %v574_v13 }
 0x1e6   : > { %583 = vst.msk [vmem:[%s226_s25 + $0x30] sm:$0xff] %vm247_vm0, %v569_v15 }
 0x1e7 PF: > { %s15_s18 = sadd.s32 1, %s848_s18  }
 0x1e8   : > { %p12_p4 = scmp.ge.s32.totalorder %s15_s18, 4  }
 0x1ea   :  { %14 = sbr.rel (!%p12_p4) target bundleno = 1 (0x1), region = 70 }

</bundles_post_ra>
